<compile_context>
chip_gen: v5e
topology: v5e:2x2
jax: 0.10.0
libtpu: 0.0.40
codegen_flags: <defaults>
</compile_context>

<pallas_src>
import math

import jax
import jax.numpy as jnp
from jax.experimental import pallas as pl
from jax.experimental.pallas import tpu as pltpu

IN_FEATURES = 1168  # fixed by the PyTorch module (nn.Linear(1168, hidden))


def _round_up(x, m):
    return (x + m - 1) // m * m


def _make_kernel(out_is_one: bool):
    def kernel(xv_ref, xa_ref, w1v_ref, w1a_ref, b1_ref, w2_ref, b2_ref, o_ref):
        # Layer 1: fused "concat + Linear" -> two bf16 MXU matmuls, f32 accum.
        h = jnp.dot(xv_ref[...], w1v_ref[...], preferred_element_type=jnp.float32)
        h = h + jnp.dot(xa_ref[...], w1a_ref[...], preferred_element_type=jnp.float32)
        # Bias + ReLU on the VPU.
        h = jnp.maximum(h + b1_ref[...], 0.0)
        if out_is_one:
            # Layer 2 (out_channels == 1): lane-dense (1, H) weight row and an
            # XLU lane reduction instead of an N=1 MXU matmul; scalar bias from
            # a 1-D SMEM ref.
            y = jnp.sum(h * w2_ref[...], axis=-1, keepdims=True) + b2_ref[0]
        else:
            # General out_channels: plain f32 matmul + broadcast bias.
            y = jnp.dot(h, w2_ref[...], preferred_element_type=jnp.float32) + b2_ref[...]
        o_ref[...] = y.astype(o_ref.dtype)

    return kernel


def downstream_model(x_video, x_audio, params):
    """Matches Downstream_model.forward(x_video, x_audio)."""
    w1v, w1a, b1, w2, b2 = params
    B, DV = x_video.shape
    DA = x_audio.shape[1]
    assert DV + DA == IN_FEATURES
    H = w1v.shape[1]
    OUT = b2.shape[1]
    out_is_one = OUT == 1

    # bf16 activations (halves the x DMA; MXU-native), f32 accumulation inside.
    xv = x_video.astype(jnp.bfloat16)
    xa = x_audio.astype(jnp.bfloat16)

    # Batch tiling: tm rows per grid step (sublane-aligned); weights stay
    # resident (constant index_map) so they're fetched from HBM exactly once.
    tm = 256 if B >= 256 else _round_up(B, 8)
    B_pad = _round_up(B, tm)
    if B_pad != B:
        xv = jnp.pad(xv, ((0, B_pad - B), (0, 0)))
        xa = jnp.pad(xa, ((0, B_pad - B), (0, 0)))
    grid = (B_pad // tm,)

    if out_is_one:
        # 1-D scalar bias in SMEM (tiny footprint, scalar read in the kernel).
        b2_in = b2.reshape((1,))
        b2_spec = pl.BlockSpec(memory_space=pltpu.SMEM)
    else:
        b2_in = b2
        b2_spec = pl.BlockSpec((1, OUT), lambda i: (0, 0))

    flops = 2 * B_pad * IN_FEATURES * H + 2 * B_pad * H * OUT
    bytes_accessed = (
        xv.size * 2 + xa.size * 2            # bf16 activations
        + w1v.size * 2 + w1a.size * 2        # bf16 weights
        + b1.size * 4 + w2.size * 4 + b2.size * 4
        + B_pad * OUT * 4                    # f32 output
    )

    out = pl.pallas_call(
        _make_kernel(out_is_one),
        out_shape=jax.ShapeDtypeStruct((B_pad, OUT), jnp.float32),
        grid=grid,
        in_specs=[
            pl.BlockSpec((tm, DV), lambda i: (i, 0)),   # x_video tile (pipelined)
            pl.BlockSpec((tm, DA), lambda i: (i, 0)),   # x_audio tile (pipelined)
            pl.BlockSpec((DV, H), lambda i: (0, 0)),    # w1_video (resident)
            pl.BlockSpec((DA, H), lambda i: (0, 0)),    # w1_audio (resident)
            pl.BlockSpec((1, H), lambda i: (0, 0)),     # b1       (resident)
            pl.BlockSpec(w2.shape, lambda i: (0, 0)),   # w2       (resident)
            b2_spec,                                    # b2 (SMEM scalar if OUT==1)
        ],
        out_specs=pl.BlockSpec((tm, OUT), lambda i: (i, 0)),
        compiler_params=pltpu.CompilerParams(
            dimension_semantics=("parallel",),  # shard batch tiles across TCs (v7x)
        ),
        cost_estimate=pl.CostEstimate(
            flops=flops, transcendentals=0, bytes_accessed=bytes_accessed
        ),
    )(xv, xa, w1v, w1a, b1, w2, b2_in)

    return out[:B] if B_pad != B else out


def init_params(key, hidden_channels, out_channels=1, video_dim=584):
    """Deterministic init mimicking nn.Linear default (uniform +-1/sqrt(fan_in)).

    W1 is stored pre-split: rows [:video_dim] of the (in, out) weight act on
    x_video (it comes first in torch.cat((x_video, x_audio), dim=1)) and rows
    [video_dim:] act on x_audio.  W1 halves are stored in bf16.
    """
    audio_dim = IN_FEATURES - video_dim
    k1, k2, k3, k4, k5 = jax.random.split(key, 5)
    bound1 = 1.0 / math.sqrt(IN_FEATURES)
    bound2 = 1.0 / math.sqrt(hidden_channels)
    w1v = jax.random.uniform(
        k1, (video_dim, hidden_channels), jnp.float32, -bound1, bound1
    ).astype(jnp.bfloat16)
    w1a = jax.random.uniform(
        k2, (audio_dim, hidden_channels), jnp.float32, -bound1, bound1
    ).astype(jnp.bfloat16)
    b1 = jax.random.uniform(k3, (1, hidden_channels), jnp.float32, -bound1, bound1)
    if out_channels == 1:
        # Lane-dense (1, H) row so the kernel can use an XLU reduction.
        w2 = jax.random.uniform(k4, (1, hidden_channels), jnp.float32, -bound2, bound2)
    else:
        w2 = jax.random.uniform(
            k4, (hidden_channels, out_channels), jnp.float32, -bound2, bound2
        )
    b2 = jax.random.uniform(k5, (1, out_channels), jnp.float32, -bound2, bound2)
    return (w1v, w1a, b1, w2, b2)


def reference(x_video, x_audio, params):
    """Pure-JAX reference at the same (bf16-in / f32-accum) precision."""
    w1v, w1a, b1, w2, b2 = params
    xv = x_video.astype(jnp.bfloat16)
    xa = x_audio.astype(jnp.bfloat16)
    h = (
        jnp.dot(xv, w1v, preferred_element_type=jnp.float32)
        + jnp.dot(xa, w1a, preferred_element_type=jnp.float32)
        + b1
    )
    h = jnp.maximum(h, 0.0)
    if b2.shape[1] == 1:
        return jnp.sum(h * w2, axis=-1, keepdims=True) + b2
    return jnp.dot(h, w2, preferred_element_type=jnp.float32) + b2


if __name__ == "__main__":
    B = 8
    hidden_channels = 128
    out_channels = 1
    video_dim = 584
    audio_dim = IN_FEATURES - video_dim  # 584; video + audio = 1168

    key = jax.random.PRNGKey(0)
    kp, kv, ka = jax.random.split(key, 3)

    params = init_params(kp, hidden_channels, out_channels, video_dim)
    x_video = jax.random.normal(kv, (B, video_dim), jnp.float32)
    x_audio = jax.random.normal(ka, (B, audio_dim), jnp.float32)

    out = jax.block_until_ready(downstream_model(x_video, x_audio, params))
    ref = jax.block_until_ready(reference(x_video, x_audio, params))

    assert out.shape == (B, out_channels)
    assert jnp.allclose(out, ref, atol=1e-3, rtol=1e-3)

    print("KERNEL_OK")
</pallas_src>

<mosaic_0001>
module attributes {stable_mosaic.version = 11 : i64} {
  func.func @kernel(%arg0: i32, %arg1: memref<8x584xbf16, #tpu.memory_space<vmem>>, %arg2: memref<8x584xbf16, #tpu.memory_space<vmem>>, %arg3: memref<584x128xbf16, #tpu.memory_space<vmem>>, %arg4: memref<584x128xbf16, #tpu.memory_space<vmem>>, %arg5: memref<1x128xf32, #tpu.memory_space<vmem>>, %arg6: memref<1x128xf32, #tpu.memory_space<vmem>>, %arg7: memref<1xf32, #tpu.memory_space<smem>>, %arg8: memref<8x1xf32, #tpu.memory_space<vmem>>) attributes {dimension_semantics = [#tpu.dimension_semantics<parallel>], iteration_bounds = array<i64: 1>, scalar_prefetch = 0 : i64, scratch_operands = 0 : i64, tpu.core_type = #tpu.core_type<tc>, window_params = [{transform_indices = @transform_0, window_bounds = array<i64: 8, 584>}, {transform_indices = @transform_1, window_bounds = array<i64: 8, 584>}, {pipeline_mode = #tpu.pipeline_mode<synchronous>, transform_indices = @transform_2, window_bounds = array<i64: 584, 128>}, {pipeline_mode = #tpu.pipeline_mode<synchronous>, transform_indices = @transform_3, window_bounds = array<i64: 584, 128>}, {pipeline_mode = #tpu.pipeline_mode<synchronous>, transform_indices = @transform_4, window_bounds = array<i64: 1, 128>}, {pipeline_mode = #tpu.pipeline_mode<synchronous>, transform_indices = @transform_5, window_bounds = array<i64: 1, 128>}, {transform_indices = @transform_6, window_bounds = array<i64: 1>}, {transform_indices = @transform_7, window_bounds = array<i64: 8, 1>}]} {
    %c0 = arith.constant 0 : index
    %c0_0 = arith.constant 0 : index
    %0 = vector.load %arg1[%c0, %c0_0] : memref<8x584xbf16, #tpu.memory_space<vmem>>, vector<8x584xbf16>
    %c0_1 = arith.constant 0 : index
    %c0_2 = arith.constant 0 : index
    %1 = vector.load %arg3[%c0_1, %c0_2] : memref<584x128xbf16, #tpu.memory_space<vmem>>, vector<584x128xbf16>
    %cst = arith.constant dense<0.000000e+00> : vector<8x128xf32>
    %2 = tpu.matmul %0, %1, %cst {dimension_numbers = #tpu.dot_dimension_numbers<[1], [0], [0], [1], [0, 0, 1, 1], [], []>} : vector<8x584xbf16>, vector<584x128xbf16>, vector<8x128xf32> -> vector<8x128xf32>
    %c0_3 = arith.constant 0 : index
    %c0_4 = arith.constant 0 : index
    %3 = vector.load %arg2[%c0_3, %c0_4] : memref<8x584xbf16, #tpu.memory_space<vmem>>, vector<8x584xbf16>
    %c0_5 = arith.constant 0 : index
    %c0_6 = arith.constant 0 : index
    %4 = vector.load %arg4[%c0_5, %c0_6] : memref<584x128xbf16, #tpu.memory_space<vmem>>, vector<584x128xbf16>
    %cst_7 = arith.constant dense<0.000000e+00> : vector<8x128xf32>
    %5 = tpu.matmul %3, %4, %cst_7 {dimension_numbers = #tpu.dot_dimension_numbers<[1], [0], [0], [1], [0, 0, 1, 1], [], []>} : vector<8x584xbf16>, vector<584x128xbf16>, vector<8x128xf32> -> vector<8x128xf32>
    %6 = arith.addf %2, %5 : vector<8x128xf32>
    %c0_8 = arith.constant 0 : index
    %c0_9 = arith.constant 0 : index
    %7 = vector.load %arg5[%c0_8, %c0_9] : memref<1x128xf32, #tpu.memory_space<vmem>>, vector<1x128xf32>
    %8 = vector.broadcast %7 : vector<1x128xf32> to vector<8x128xf32>
    %9 = arith.addf %6, %8 : vector<8x128xf32>
    %cst_10 = arith.constant 0.000000e+00 : f32
    %10 = vector.broadcast %cst_10 : f32 to vector<8x128xf32>
    %11 = arith.maximumf %9, %10 : vector<8x128xf32>
    %c0_11 = arith.constant 0 : index
    %c0_12 = arith.constant 0 : index
    %12 = vector.load %arg6[%c0_11, %c0_12] : memref<1x128xf32, #tpu.memory_space<vmem>>, vector<1x128xf32>
    %13 = vector.broadcast %12 : vector<1x128xf32> to vector<8x128xf32>
    %14 = arith.mulf %11, %13 : vector<8x128xf32>
    %cst_13 = arith.constant dense<0.000000e+00> : vector<8xf32>
    %15 = vector.multi_reduction <add>, %14, %cst_13 [1] : vector<8x128xf32> to vector<8xf32>
    %16 = vector.shape_cast %15 : vector<8xf32> to vector<8x1xf32>
    %c0_14 = arith.constant 0 : index
    %17 = memref.load %arg7[%c0_14] : memref<1xf32, #tpu.memory_space<smem>>
    %18 = vector.broadcast %17 : f32 to vector<8x1xf32>
    %19 = arith.addf %16, %18 : vector<8x1xf32>
    %c0_15 = arith.constant 0 : index
    %c0_16 = arith.constant 0 : index
    %20 = vector.load %arg8[%c0_15, %c0_16] : memref<8x1xf32, #tpu.memory_space<vmem>>, vector<8x1xf32>
    tpu.vector_store %arg8[%c0_15, %c0_16], %19 {strides = array<i32>} : memref<8x1xf32, #tpu.memory_space<vmem>>, vector<8x1xf32>,
    return
  }
  func.func @transform_0(%arg0: i32) -> (i32, i32) {
    %c0_i32 = arith.constant 0 : i32
    %c0_i32_0 = arith.constant 0 : i32
    return %arg0, %c0_i32 : i32, i32
  }
  func.func @transform_1(%arg0: i32) -> (i32, i32) {
    %c0_i32 = arith.constant 0 : i32
    %c0_i32_0 = arith.constant 0 : i32
    return %arg0, %c0_i32 : i32, i32
  }
  func.func @transform_2(%arg0: i32) -> (i32, i32) {
    %c0_i32 = arith.constant 0 : i32
    %c0_i32_0 = arith.constant 0 : i32
    %c0_i32_1 = arith.constant 0 : i32
    return %c0_i32, %c0_i32_0 : i32, i32
  }
  func.func @transform_3(%arg0: i32) -> (i32, i32) {
    %c0_i32 = arith.constant 0 : i32
    %c0_i32_0 = arith.constant 0 : i32
    %c0_i32_1 = arith.constant 0 : i32
    return %c0_i32, %c0_i32_0 : i32, i32
  }
  func.func @transform_4(%arg0: i32) -> (i32, i32) {
    %c0_i32 = arith.constant 0 : i32
    %c0_i32_0 = arith.constant 0 : i32
    %c0_i32_1 = arith.constant 0 : i32
    return %c0_i32, %c0_i32_0 : i32, i32
  }
  func.func @transform_5(%arg0: i32) -> (i32, i32) {
    %c0_i32 = arith.constant 0 : i32
    %c0_i32_0 = arith.constant 0 : i32
    %c0_i32_1 = arith.constant 0 : i32
    return %c0_i32, %c0_i32_0 : i32, i32
  }
  func.func @transform_6(%arg0: i32) -> i32 {
    %c0_i32 = arith.constant 0 : i32
    %c0_i32_0 = arith.constant 0 : i32
    return %c0_i32 : i32
  }
  func.func @transform_7(%arg0: i32) -> (i32, i32) {
    %c0_i32 = arith.constant 0 : i32
    %c0_i32_0 = arith.constant 0 : i32
    return %arg0, %c0_i32 : i32, i32
  }
}

</mosaic_0001>

<bundles_post_ra>
// kernel: tpu_custom_call.1
= control target key start
LH: loop header
LB: loop body
LE: loop exit
PB: predicated region body
PF: predicated region fallthrough
CT: control target
= control target key end

     0   :  { %13 = vsyncpa [#allocation4], 0  ;;  %s1426_s0 = inlined_call_operand.hbm [shape: bf16[8,584], index: 0, kind: input, shape index: {}]   ;;  %s1427_s1 = inlined_call_operand.hbm [shape: bf16[8,584], index: 1, kind: input, shape index: {}]   ;;  %s1428_s2 = inlined_call_operand.hbm [shape: bf16[584,128], index: 2, kind: input, shape index: {}]   ;;  %s1429_s3 = inlined_call_operand.hbm [shape: bf16[584,128], index: 3, kind: input, shape index: {}]   ;;  %s1430_s4 = inlined_call_operand.vmem [shape: f32[1,128], index: 4, kind: input, shape index: {}]   ;;  %s1431_s5 = inlined_call_operand.vmem [shape: f32[1,128], index: 5, kind: input, shape index: {}]   ;;  %s1432_s6 = inlined_call_operand.<no memory space> [shape: f32[1], index: 6, kind: input, shape index: {}]   ;;  %s1433_s7 = inlined_call_operand.vmem [shape: f32[8,1], index: 7, kind: output, shape index: {}]  }
   0x1   :  { %14 = vsyncpa [#allocation6], 0  ;;  %s32_s26 = sshll.u32 %s1427_s1, 4  ;;  %s33_s26 = int_to_ptr.hbm [resolvable:$true] %s32_s26 }
   0x2   :  { %15 = vsyncpa [#allocation9], 0  ;;  %s1352_s27 = smov [#allocation5]   ;;  %s21_s8 = sshll.u32 %s1426_s0, 4  ;;  %s22_s8 = int_to_ptr.hbm [resolvable:$true] %s21_s8 }
   0x3   :  { %s34_s28 = sshll.u32 %s1352_s27, 4  ;;  %s1353_s9 = smov [#allocation3]   ;;  %s35_s28 = int_to_ptr.vmem [resolvable:$true] %s34_s28 }
   0x4   :  { %37 = dma.hbm_to_vmem [thread:$0]  %s33_s26, 320, %s35_s28, [#allocation6]  }
   0x5   :  { %s23_s10 = sshll.u32 %s1353_s9, 4  ;;  %s42_s13 = sshll.u32 %s1428_s2, 4  ;;  %s24_s10 = int_to_ptr.vmem [resolvable:$true] %s23_s10  ;;  %s43_s13 = int_to_ptr.hbm [resolvable:$true] %s42_s13 }
   0x6   :  { %26 = dma.hbm_to_vmem [thread:$0]  %s22_s8, 320, %s24_s10, [#allocation4]  }
   0x7   :  { %s1354_s1 = smov [#allocation7]   ;;  %s55_s17 = sshll.u32 %s1429_s3, 4  ;;  %s56_s17 = int_to_ptr.hbm [resolvable:$true] %s55_s17 }
   0x8   :  { %s44_s14 = sshll.u32 %s1354_s1, 4  ;;  %s1355_s18 = smov 64   ;;  %s45_s14 = int_to_ptr.vmem [resolvable:$true] %s44_s14 }
   0x9   :  { %s1356_s0 = smov 4   ;;  %s1357_s19 = smov [#allocation8]  }
   0xa   :  { %50 = dma.hbm_to_vmem [thread:$0]  %s43_s13, 4672, %s45_s14, [#allocation6], %s1355_s18, %s1355_s18, %s1356_s0  }
   0xb   :  { %s57_s20 = sshll.u32 %s1357_s19, 4  ;;  %s58_s20 = int_to_ptr.vmem [resolvable:$true] %s57_s20 }
   0xc   :  { %63 = dma.hbm_to_vmem [thread:$0]  %s56_s17, 4672, %s58_s20, [#allocation9], %s1355_s18, %s1355_s18, %s1356_s0  }
   0xd   :  { %1346 = dma.done.wait [#allocation4], 320  }
   0xe   :  { %1347 = vsyncadd [#allocation4], 4294966976 }
   0xf   :  { %1348 = dma.done.wait [#allocation6], 4992  }
  0x10   :  { %1349 = vsyncadd [#allocation6], 4294962304 }
  0x11   :  { %1350 = dma.done.wait [#allocation9], 4672  }
  0x12   :  { %1351 = vsyncadd [#allocation9], 4294962624  ;;  %v1213_v0 = vld [vmem:[#allocation8 + $0x38] sm:$0xff]  ;;  %v1212_v4 = vld [vmem:[#allocation8 + $0x30] sm:$0xff]  ;;  %vm479_vm0 = vcmask 1043456   ;;  %vm475_vm1 = vcmask 588800  }
  0x13   :  { %v1221_v1 = vld [vmem:[#allocation8 + $0x78] sm:$0xff]  ;;  %483 = vmatpush.bf16.msra.mxu0 %v1213_v0  ;;  %v1220_v5 = vld [vmem:[#allocation8 + $0x70] sm:$0xff]  ;;  %v1211_v8 = vld [vmem:[#allocation8 + $0x28] sm:$0xff]  ;;  %vm871_vm2 = vcmask 7168  }
  0x14   :  { %v1229_v2 = vld [vmem:[#allocation8 + $0xb8] sm:$0xff]  ;;  %496 = vmatpush.bf16.msra.mxu1 %v1221_v1  ;;  %v1228_v6 = vld [vmem:[#allocation8 + $0xb0] sm:$0xff]  ;;  %v1219_v9 = vld [vmem:[#allocation8 + $0x68] sm:$0xff] }
  0x15   :  { %v1237_v3 = vld [vmem:[#allocation8 + $0xf8] sm:$0xff]  ;;  %509 = vmatpush.bf16.msra.mxu2 %v1229_v2  ;;  %v1236_v7 = vld [vmem:[#allocation8 + $0xf0] sm:$0xff]  ;;  %v1227_v10 = vld [vmem:[#allocation8 + $0xa8] sm:$0xff] }
  0x16   :  { %522 = vmatpush.bf16.msra.mxu3 %v1237_v3  ;;  %v1235_v11 = vld [vmem:[#allocation8 + $0xe8] sm:$0xff]  ;;  %v1210_v12 = vld [vmem:[#allocation8 + $0x20] sm:$0xff]  ;;  %v1209_v16 = vld [vmem:[#allocation8 + $0x18] sm:$0xff] }
  0x17   :  { %484 = vmatpush.bf16.msra.mxu0 %v1212_v4  ;;  %v1218_v13 = vld [vmem:[#allocation8 + $0x60] sm:$0xff]  ;;  %v1217_v17 = vld [vmem:[#allocation8 + $0x58] sm:$0xff]  ;;  %v1208_v20 = vld [vmem:[#allocation8 + $0x10] sm:$0xff] }
  0x18   :  { %497 = vmatpush.bf16.msra.mxu1 %v1220_v5  ;;  %v1226_v14 = vld [vmem:[#allocation8 + $0xa0] sm:$0xff]  ;;  %v1225_v18 = vld [vmem:[#allocation8 + $0x98] sm:$0xff]  ;;  %v1216_v21 = vld [vmem:[#allocation8 + $0x50] sm:$0xff] }
  0x19   :  { %510 = vmatpush.bf16.msra.mxu2 %v1228_v6  ;;  %v1234_v15 = vld [vmem:[#allocation8 + $0xe0] sm:$0xff]  ;;  %v1233_v19 = vld [vmem:[#allocation8 + $0xd8] sm:$0xff]  ;;  %v1224_v23 = vld [vmem:[#allocation8 + $0x90] sm:$0xff] }
  0x1a   :  { %523 = vmatpush.bf16.msra.mxu3 %v1236_v7  ;;  %v238_v22 = vld [vmem:[#allocation8 + $0x120] sm:$0xf]  ;;  %v1232_v24 = vld [vmem:[#allocation8 + $0xd0] sm:$0xff]  ;;  %v1207_v26 = vld [vmem:[#allocation8 + $0x8] sm:$0xff] }
  0x1b   :  { %485 = vmatpush.bf16.msra.mxu0 %v1211_v8  ;;  %v401_v25 = vunpack.c.l.b16 %v238_v22  ;;  %v1215_v27 = vld [vmem:[#allocation8 + $0x48] sm:$0xff]  ;;  %v164_v31 = vld [vmem:[#allocation5 + $0x8] sm:$0xff]  ;;  %v1206_v33 = vld [vmem:[#allocation8] sm:$0xff] }
  0x1c   :  { %498 = vmatpush.bf16.msra.mxu1 %v1219_v9  ;;  %v1223_v28 = vld [vmem:[#allocation8 + $0x88] sm:$0xff]  ;;  %v1214_v34 = vld [vmem:[#allocation8 + $0x40] sm:$0xff]  ;;  %v244_v39 = vunpack.c.l.b16 %v164_v31  ;;  %v245_v40 = vunpack.c.h.b16 %v164_v31  ;;  %v1177_v41 = vld [vmem:[#allocation7 + $0x38] sm:$0xff] }
  0x1d   :  { %511 = vmatpush.bf16.msra.mxu2 %v1227_v10  ;;  %v1231_v29 = vld [vmem:[#allocation8 + $0xc8] sm:$0xff]  ;;  %v438_v32 = vpack.c.b16 %v401_v25, %v401_v25  ;;  %v1222_v37 = vld [vmem:[#allocation8 + $0x80] sm:$0xff]  ;;  %v1185_v43 = vld [vmem:[#allocation7 + $0x78] sm:$0xff] }
  0x1e   :  { %524 = vmatpush.bf16.msra.mxu3 %v1235_v11  ;;  %v163_v30 = vld [vmem:[#allocation5] sm:$0xff]  ;;  %v1230_v38 = vld [vmem:[#allocation8 + $0xc0] sm:$0xff]  ;;  %v1193_v44 = vld [vmem:[#allocation7 + $0xb8] sm:$0xff]  ;;  %v249_v47 = vpack.c.b16 %v244_v39, %v244_v39  ;;  %v250_v48 = vpack.c.b16 %v245_v40, %v245_v40 }
  0x1f   :  { %486 = vmatpush.bf16.msra.mxu0 %v1210_v12  ;;  %v242_v35 = vunpack.c.l.b16 %v163_v30  ;;  %v243_v36 = vunpack.c.h.b16 %v163_v30  ;;  %v481_v42 = vsel %vm479_vm0, %v438_v32, 0  ;;  %v1241_v49 = vld [vmem:[#allocation8 + $0x118] sm:$0xff]  ;;  %v1176_v50 = vld [vmem:[#allocation7 + $0x30] sm:$0xff]  ;;  %v1175_v54 = vld [vmem:[#allocation7 + $0x28] sm:$0xff] }
  0x20   :  { %499 = vmatpush.bf16.msra.mxu1 %v1218_v13  ;;  %v1184_v51 = vld [vmem:[#allocation7 + $0x70] sm:$0xff]  ;;  %v1183_v55 = vld [vmem:[#allocation7 + $0x68] sm:$0xff]  ;;  %v1174_v58 = vld [vmem:[#allocation7 + $0x20] sm:$0xff] }
  0x21   :  { %512 = vmatpush.bf16.msra.mxu2 %v1226_v14  ;;  %v247_v45 = vpack.c.b16 %v242_v35, %v242_v35  ;;  %v248_v46 = vpack.c.b16 %v243_v36, %v243_v36  ;;  %v1192_v52 = vld [vmem:[#allocation7 + $0xb0] sm:$0xff]  ;;  %v1191_v56 = vld [vmem:[#allocation7 + $0xa8] sm:$0xff]  ;;  %v165_v59 = vld [vmem:[#allocation5 + $0x10] sm:$0xf] }
  0x22   :  { %525 = vmatpush.bf16.msra.mxu3 %v1234_v15  ;;  %v1240_v53 = vld [vmem:[#allocation8 + $0x110] sm:$0xff]  ;;  %v1239_v57 = vld [vmem:[#allocation8 + $0x108] sm:$0xff]  ;;  %v1182_v60 = vld [vmem:[#allocation7 + $0x60] sm:$0xff]  ;;  %v246_v62 = vunpack.c.l.b16 %v165_v59 }
  0x23   :  { %487 = vmatpush.bf16.msra.mxu0 %v1209_v16  ;;  %v1190_v61 = vld [vmem:[#allocation7 + $0xa0] sm:$0xff]  ;;  %v1173_v0 = vld [vmem:[#allocation7 + $0x18] sm:$0xff]  ;;  %v1172_v6 = vld [vmem:[#allocation7 + $0x10] sm:$0xff] }
  0x24   :  { %500 = vmatpush.bf16.msra.mxu1 %v1217_v17  ;;  %v1238_v63 = vld [vmem:[#allocation8 + $0x100] sm:$0xff]  ;;  %v1181_v1 = vld [vmem:[#allocation7 + $0x58] sm:$0xff]  ;;  %v251_v4 = vpack.c.b16 %v246_v62, %v246_v62  ;;  %v162_v5 = vld [vmem:[#allocation7 + $0x120] sm:$0xf] }
  0x25   :  { %513 = vmatpush.bf16.msra.mxu2 %v1225_v18  ;;  %v1189_v2 = vld [vmem:[#allocation7 + $0x98] sm:$0xff]  ;;  %v1180_v7 = vld [vmem:[#allocation7 + $0x50] sm:$0xff]  ;;  %v710_v10 = vunpack.c.l.b16 %v162_v5  ;;  %v1171_v11 = vld [vmem:[#allocation7 + $0x8] sm:$0xff] }
  0x26   :  { %526 = vmatpush.bf16.msra.mxu3 %v1233_v19  ;;  %v1201_v3 = vld [vmem:[#allocation7 + $0xf8] sm:$0xff]  ;;  %v1188_v8 = vld [vmem:[#allocation7 + $0x90] sm:$0xff]  ;;  %v1179_v13 = vld [vmem:[#allocation7 + $0x48] sm:$0xff] }
  0x27   :  { %488 = vmatpush.bf16.msra.mxu0 %v1208_v20  ;;  %v1200_v9 = vld [vmem:[#allocation7 + $0xf0] sm:$0xff]  ;;  %v87_v12 = vld [vmem:[#allocation3] sm:$0xff]  ;;  %v1187_v14 = vld [vmem:[#allocation7 + $0x88] sm:$0xff]  ;;  %v747_v17 = vpack.c.b16 %v710_v10, %v710_v10 }
  0x28   :  { %501 = vmatpush.bf16.msra.mxu1 %v1216_v21  ;;  %v88_v15 = vld [vmem:[#allocation3 + $0x8] sm:$0xff]  ;;  %v1199_v16 = vld [vmem:[#allocation7 + $0xe8] sm:$0xff]  ;;  %v551_v18 = vunpack.c.l.b16 %v87_v12  ;;  %v552_v20 = vunpack.c.h.b16 %v87_v12  ;;  %v1205_v30 = vld [vmem:[#allocation7 + $0x118] sm:$0xff]  ;;  %v869_v12 = vstv %s1432_s6 }
  0x29   :  { %514 = vmatpush.bf16.msra.mxu2 %v1224_v23  ;;  %v1170_v19 = vld [vmem:[#allocation7] sm:$0xff]  ;;  %v553_v21 = vunpack.c.l.b16 %v88_v15  ;;  %v788_v25 = vsel %vm479_vm0, %v747_v17, 0  ;;  %v1196_v31 = vld [vmem:[#allocation7 + $0xd0] sm:$0xff]  ;;  %v89_v35 = vld [vmem:[#allocation3 + $0x10] sm:$0xf]  ;;  %v554_v36 = vunpack.c.h.b16 %v88_v15 }
  0x2a   :  { %527 = vmatpush.bf16.msra.mxu3 %v1232_v24  ;;  %v1178_v22 = vld [vmem:[#allocation7 + $0x40] sm:$0xff]  ;;  %v1204_v32 = vld [vmem:[#allocation7 + $0x110] sm:$0xff] }
  0x2b   :  { %489 = vmatpush.bf16.msra.mxu0 %v1207_v26  ;;  %v1186_v23 = vld [vmem:[#allocation7 + $0x80] sm:$0xff]  ;;  %v556_v26 = vpack.c.b16 %v551_v18, %v551_v18  ;;  %v559_v40 = vpack.c.b16 %v554_v36, %v554_v36 }
  0x2c   :  { %502 = vmatpush.bf16.msra.mxu1 %v1215_v27  ;;  %v1198_v24 = vld [vmem:[#allocation7 + $0xe0] sm:$0xff]  ;;  %v557_v27 = vpack.c.b16 %v552_v20, %v552_v20 }
  0x2d   :  { %515 = vmatpush.bf16.msra.mxu2 %v1223_v28  ;;  %v558_v28 = vpack.c.b16 %v553_v21, %v553_v21  ;;  %v1202_v39 = vld [vmem:[#allocation7 + $0x100] sm:$0xff] }
  0x2e   :  { %528 = vmatpush.bf16.msra.mxu3 %v1231_v29  ;;  %v1197_v29 = vld [vmem:[#allocation7 + $0xd8] sm:$0xff] }
  0x2f   :  { %490 = vmatpush.bf16.msra.mxu0 %v1206_v33  ;;  %v1195_v33 = vld [vmem:[#allocation7 + $0xc8] sm:$0xff] }
  0x30   :  { %503 = vmatpush.bf16.msra.mxu1 %v1214_v34  ;;  %v1203_v34 = vld [vmem:[#allocation7 + $0x108] sm:$0xff] }
  0x31   :  { %516 = vmatpush.bf16.msra.mxu2 %v1222_v37  ;;  %v555_v37 = vunpack.c.l.b16 %v89_v35 }
  0x32   :  { %529 = vmatpush.bf16.msra.mxu3 %v1230_v38  ;;  %491 = vmatmul.bf16.vlgmr.msra.gmra.mxu0 %v247_v45  ;;  %v1194_v38 = vld [vmem:[#allocation7 + $0xc0] sm:$0xff] }
  0x33   :  { %538 = vmatpush.bf16.msrb.mxu0 %v481_v42  ;;  %504 = vmatmul.bf16.vlgmr.msra.gmra.mxu1 %v248_v46 }
  0x34   :  { %790 = vmatpush.bf16.msrb.mxu1 %v1177_v41  ;;  %517 = vmatmul.bf16.vlgmr.msra.gmra.mxu2 %v249_v47  ;;  %v560_v41 = vpack.c.b16 %v555_v37, %v555_v37 }
  0x35   :  { %803 = vmatpush.bf16.msrb.mxu2 %v1185_v43  ;;  %530 = vmatmul.bf16.vlgmr.msra.gmra.mxu3 %v250_v48 }
  0x36   :  { %816 = vmatpush.bf16.msrb.mxu3 %v1193_v44 }
  0x37   :  { %539 = vmatpush.bf16.msrb.mxu0 %v1241_v49 }
  0x38   :  { %791 = vmatpush.bf16.msrb.mxu1 %v1176_v50 }
  0x39   :  { %804 = vmatpush.bf16.msrb.mxu2 %v1184_v51 }
  0x3a   :  { %817 = vmatpush.bf16.msrb.mxu3 %v1192_v52 }
  0x3b   :  { %540 = vmatpush.bf16.msrb.mxu0 %v1240_v53 }
  0x3c   :  { %792 = vmatpush.bf16.msrb.mxu1 %v1175_v54 }
  0x3d   :  { %805 = vmatpush.bf16.msrb.mxu2 %v1183_v55 }
  0x3e   :  { %818 = vmatpush.bf16.msrb.mxu3 %v1191_v56 }
  0x3f   :  { %541 = vmatpush.bf16.msrb.mxu0 %v1239_v57 }
  0x40   :  { %793 = vmatpush.bf16.msrb.mxu1 %v1174_v58 }
  0x41   :  { %806 = vmatpush.bf16.msrb.mxu2 %v1182_v60 }
  0x42   :  { %819 = vmatpush.bf16.msrb.mxu3 %v1190_v61 }
  0x43   :  { %542 = vmatpush.bf16.msrb.mxu0 %v1238_v63 }
  0x44   :  { %794 = vmatpush.bf16.msrb.mxu1 %v1173_v0 }
  0x45   :  { %807 = vmatpush.bf16.msrb.mxu2 %v1181_v1 }
  0x46   :  { %820 = vmatpush.bf16.msrb.mxu3 %v1189_v2  ;;  %1024 = vmatmul.msk.bf16.vlgmr.msrb.gmra.mxu0 %vm475_vm1, %v251_v4  ;;  %v1248_v4 = vld [vmem:[%s1430_s4] ss:$0 sm:$0xff] }
  0x47   :  { %829 = vmatpush.bf16.msra.mxu0 %v1201_v3 }
  0x48   :  { %795 = vmatpush.bf16.msrb.mxu1 %v1172_v6 }
  0x49   :  { %808 = vmatpush.bf16.msrb.mxu2 %v1180_v7  ;;  %v1249_v7 = vld [vmem:[%s1431_s5] ss:$0 sm:$0xff] }
  0x4a   :  { %821 = vmatpush.bf16.msrb.mxu3 %v1188_v8 }
  0x4b   :  { %830 = vmatpush.bf16.msra.mxu0 %v1200_v9 }
  0x4c   :  { %796 = vmatpush.bf16.msrb.mxu1 %v1171_v11 }
  0x4d   :  { %809 = vmatpush.bf16.msrb.mxu2 %v1179_v13 }
  0x4e   :  { %822 = vmatpush.bf16.msrb.mxu3 %v1187_v14 }
  0x4f   :  { %831 = vmatpush.bf16.msra.mxu0 %v1199_v16 }
  0x50   :  { %797 = vmatpush.bf16.msrb.mxu1 %v1170_v19 }
  0x51   :  { %810 = vmatpush.bf16.msrb.mxu2 %v1178_v22 }
  0x52   :  { %823 = vmatpush.bf16.msrb.mxu3 %v1186_v23 }
  0x53   :  { %832 = vmatpush.bf16.msra.mxu0 %v1198_v24  ;;  %798 = vmatmul.bf16.vlgmr.msrb.gmra.mxu1 %v556_v26 }
  0x54   :  { %845 = vmatpush.bf16.msra.mxu1 %v788_v25  ;;  %811 = vmatmul.bf16.vlgmr.msrb.gmra.mxu2 %v557_v27 }
  0x55   :  { %824 = vmatmul.bf16.vlgmr.msrb.gmra.mxu3 %v558_v28 }
  0x57   :  { %833 = vmatpush.bf16.msra.mxu0 %v1197_v29 }
  0x58   :  { %846 = vmatpush.bf16.msra.mxu1 %v1205_v30 }
  0x5b   :  { %834 = vmatpush.bf16.msra.mxu0 %v1196_v31 }
  0x5c   :  { %847 = vmatpush.bf16.msra.mxu1 %v1204_v32 }
  0x5f   :  { %835 = vmatpush.bf16.msra.mxu0 %v1195_v33 }
  0x60   :  { %848 = vmatpush.bf16.msra.mxu1 %v1203_v34 }
  0x63   :  { %836 = vmatpush.bf16.msra.mxu0 %v1194_v38 }
  0x64   :  { %849 = vmatpush.bf16.msra.mxu1 %v1202_v39 }
  0x66   :  { %837 = vmatmul.bf16.vlgmr.msra.gmra.mxu0 %v559_v40 }
  0x67   :  { %1169 = vmatmul.msk.bf16.vlgmr.msra.gmra.mxu1 %vm475_vm1, %v560_v41 }
  0xaf   :  { %v492_v42 = vpop.f32.mrf.mxu0 }
  0xb0   :  { %v505_v43 = vpop.f32.mrf.mxu1 }
  0xb1   :  { %v506_v52 = vadd.f32 %v505_v43, %v492_v42 }
  0xb7   :  { %v518_v44 = vpop.f32.mrf.mxu2  ;;  %v494_v46 = vpop.f32.mrf.mxu0 }
  0xb8   :  { %v531_v45 = vpop.f32.mrf.mxu3  ;;  %v507_v47 = vpop.f32.mrf.mxu1  ;;  %v519_v54 = vadd.f32 %v518_v44, %v506_v52 }
  0xba   :  { %v532_v55 = vadd.f32 %v531_v45, %v519_v54 }
  0xbf   :  { %v520_v48 = vpop.f32.mrf.mxu2 }
  0xc0   :  { %v533_v49 = vpop.f32.mrf.mxu3 }
  0xc3   :  { %v544_v50 = vpop.f32.mrf.mxu0 }
  0xc4   :  { %v545_v59 = vadd.f32 %v544_v50, %v532_v55 }
  0xcb   :  { %v546_v51 = vpop.f32.mrf.mxu0 }
  0xd0   :  { %v799_v53 = vpop.f32.mrf.mxu1 }
  0xd1   :  { %v800_v60 = vadd.f32 %v799_v53, %v545_v59 }
  0xd7   :  { %v812_v56 = vpop.f32.mrf.mxu2 }
  0xd8   :  { %v825_v57 = vpop.f32.mrf.mxu3  ;;  %v801_v58 = vpop.f32.mrf.mxu1  ;;  %v813_v61 = vadd.f32 %v812_v56, %v800_v60 }
  0xda   :  { %v826_v0 = vadd.f32 %v825_v57, %v813_v61 }
  0xdf   :  { %v814_v62 = vpop.f32.mrf.mxu2 }
  0xe0   :  { %v827_v63 = vpop.f32.mrf.mxu3 }
  0xe3   :  { %v838_v1 = vpop.f32.mrf.mxu0 }
  0xe4   :  { %v851_v2 = vpop.f32.mrf.mxu1  ;;  %v839_v3 = vadd.f32 %v838_v1, %v826_v0 }
  0xe6   :  { %v852_v5 = vadd.f32 %v851_v2, %v839_v3 }
  0xe8   :  { %v859_v6 = vadd.f32 %v1248_v4, %v852_v5 }
  0xea   :  { %v860_v8 = vmax.f32 %v859_v6, 0.0 }
  0xeb   :  { %v840_v9 = vpop.f32.mrf.mxu0 }
  0xec   :  { %v853_v10 = vpop.f32.mrf.mxu1  ;;  %v865_v11 = vmul.f32 %v1249_v7, %v860_v8 }
  0xee   :  { %866 = vadd.xlane.f32.xlu0 %v865_v11 }
 0x161   :  { %v867_v13 = vpop.xlane.xlu0 %866 }
 0x162   :  { %v870_v14 = vadd.f32 %v869_v12, %v867_v13 }
 0x164   :  { %872 = vst.msk [vmem:[%s1433_s7] sm:$0xff] %vm871_vm2, %v870_v14 }
 0x165   :  { %877 = vsyncpa [#allocation4], 1 }
 0x166   :  { %878 = vsyncpa [#allocation6], 1 }
 0x167   :  { %879 = vsyncpa [#allocation9], 1 }

</bundles_post_ra>
